<compile_context>
chip_gen: v7x
topology: tpu7x:2x2x1
jax: 0.10.0
libtpu: 0.0.40
codegen_flags: <defaults>
</compile_context>

<pallas_src>
import math

import jax
import jax.numpy as jnp
from jax.experimental import pallas as pl
from jax.experimental.pallas import tpu as pltpu


def _cdiv(a, b):
    return -(-a // b)


def _jodie_kernel(td_ref, h_ref, w_ref, b1_ref, o_ref):
    """One row block.

    td_ref : [rows, fold]       time_diff, one scalar per original row
    h_ref  : [rows, fold*D]     `fold` original rows folded into the lane axis
    w_ref  : [fold, fold*D]     row j = weight masked to lane segment j (resident)
    b1_ref : [1, fold*D]        (1 + bias) tiled across the fold segments (resident)
    o_ref  : [rows, fold*D]
    """
    # K=fold reduction on the otherwise-idle MXU (vector-extended slot):
    # emb[r, l] = td[r, l // D] * weight[l % D]
    emb = jnp.dot(td_ref[...], w_ref[...], preferred_element_type=jnp.float32)
    emb = emb + b1_ref[...]                       # broadcast add of (1 + bias)
    o_ref[...] = (h_ref[...] * emb).astype(o_ref.dtype)


def _jodie_ref(h, mem_ts, ts, weight, bias):
    """Pure-JAX reference mirroring the PyTorch forward (also the tiny-tail path)."""
    time_diff = ((ts - mem_ts) / (ts + 1.0)).astype(jnp.float32)
    emb = time_diff[:, None] * weight.astype(jnp.float32)[None, :] \
        + bias.astype(jnp.float32)[None, :]
    return (h * (1.0 + emb)).astype(h.dtype)


def make_jodie_time_embedding(weight, bias, *,
                              block_bytes=8 * 1024 * 1024,
                              block_rows=None,
                              vmem_limit_bytes=48 * 1024 * 1024):
    """Build the forward fn once per layer.

    weight, bias: [D] (flattened Linear(1, D) parameters).  The folded
    weight/bias tables depend only on these, so they are precomputed here
    instead of being rebuilt on every call.
    Returns forward(h [N, D], mem_ts [N], ts [N]) -> [N, D] (dtype follows h).
    """
    weight = jnp.asarray(weight)
    bias = jnp.asarray(bias)
    D = weight.shape[0]

    # Lane-fold factor: smallest fold with (fold * D) % 128 == 0.  With the
    # reduction on the MXU, larger folds only grow the tiny resident table.
    fold = 128 // math.gcd(D, 128)
    fD = fold * D

    w32 = weight.astype(jnp.float32)
    b1 = (1.0 + bias).astype(jnp.float32)                 # fold the "+1" into the bias
    lane_seg = jnp.arange(fD, dtype=jnp.int32) // D        # which fold segment a lane is in
    seg_ids = jnp.arange(fold, dtype=jnp.int32)[:, None]
    w_rows = jnp.where(lane_seg[None, :] == seg_ids,
                       jnp.tile(w32, fold)[None, :], 0.0)  # [fold, fD]
    b1_row = jnp.tile(b1, fold)[None, :]                    # [1, fD]

    def forward(h, mem_ts, ts):
        N, D_in = h.shape
        assert D_in == D, f"h has dim {D_in}, layer built for {D}"
        out_dtype = h.dtype
        itemsize = jnp.dtype(out_dtype).itemsize

        nf = N // fold          # folded rows handled by the kernel
        n_main = nf * fold      # rows handled by the kernel (tail < fold rows)

        if nf < 8:
            # Too small to be worth a kernel launch / exact-reshape games.
            return _jodie_ref(h, mem_ts, ts, weight, bias)

        # Tiny O(N) host-side prologue: ship time_diff as one small input
        # instead of two per-step (rows, 1) blocks.
        td = ((ts - mem_ts) / (ts + 1.0)).astype(jnp.float32)

        h_main = h if n_main == N else h[:n_main]
        td_main = td if n_main == N else td[:n_main]
        h_f = h_main.reshape(nf, fD)          # free contiguous reshape
        td_f = td_main.reshape(nf, fold)

        # Row-block sizing: ~block_bytes per h/out buffer, but keep >=4 grid
        # steps when nf allows so megacore ("parallel") can shard across both
        # v7x TensorCores.  The last block may be partial; Pallas masks it.
        if block_rows is None:
            auto = max(8, (block_bytes // (fD * itemsize)) // 8 * 8)
            steps_cap = max(8, _cdiv(_cdiv(nf, 4), 8) * 8)
            rows = max(8, min(auto, steps_cap))
        else:
            rows = max(8, (block_rows // 8) * 8)
        grid = (pl.cdiv(nf, rows),)

        cost = pl.CostEstimate(
            flops=3 * n_main * D,
            transcendentals=0,
            bytes_accessed=2 * n_main * D * itemsize + n_main * 4,
        )

        out_f = pl.pallas_call(
            _jodie_kernel,
            out_shape=jax.ShapeDtypeStruct((nf, fD), out_dtype),
            grid=grid,
            in_specs=[
                pl.BlockSpec((rows, fold), lambda i: (i, 0)),   # time_diff
                pl.BlockSpec((rows, fD), lambda i: (i, 0)),     # h (lane-folded)
                pl.BlockSpec((fold, fD), lambda i: (0, 0)),     # weight rows (resident)
                pl.BlockSpec((1, fD), lambda i: (0, 0)),        # 1 + bias   (resident)
            ],
            out_specs=pl.BlockSpec((rows, fD), lambda i: (i, 0)),
            compiler_params=pltpu.CompilerParams(
                dimension_semantics=("parallel",),              # megacore sharding
                vmem_limit_bytes=vmem_limit_bytes,
            ),
            cost_estimate=cost,
        )(td_f, h_f, w_rows, b1_row)

        out_main = out_f.reshape(n_main, D)
        if n_main == N:
            return out_main

        # Ragged tail (< fold rows): plain JAX instead of the old
        # jnp.pad(h) + [:N] slice, which tripled end-to-end HBM traffic.
        # TODO(synk): write the tail into the kernel output via donation to
        # avoid the concatenate re-writing out_main when this path is hot.
        out_tail = _jodie_ref(h[n_main:], mem_ts[n_main:], ts[n_main:], weight, bias)
        return jnp.concatenate([out_main, out_tail], axis=0)

    return forward


def jodie_time_embedding(h, mem_ts, ts, weight, bias, **kwargs):
    """One-shot convenience wrapper (prefer make_jodie_time_embedding per layer)."""
    return make_jodie_time_embedding(weight, bias, **kwargs)(h, mem_ts, ts)


if __name__ == "__main__":
    key = jax.random.PRNGKey(0)
    k_h, k_mt, k_ts, k_w, k_b = jax.random.split(key, 5)

    D = 32  # dim_out; not a multiple of 128 -> exercises the lane fold (fold=4)
    # NormalLinear(1, D): weight [D, 1] ~ N(0, 1), bias [D] ~ N(0, 1) (stdv = 1).
    weight = jax.random.normal(k_w, (D,), dtype=jnp.float32)   # flattened [D, 1] -> [D]
    bias = jax.random.normal(k_b, (D,), dtype=jnp.float32)

    layer = jax.jit(make_jodie_time_embedding(weight, bias))

    def make_inputs(n, dtype):
        h = jax.random.normal(k_h, (n, D), dtype=jnp.float32).astype(dtype)
        mem_ts = jax.random.uniform(k_mt, (n,), jnp.float32, minval=0.0, maxval=10.0)
        ts = mem_ts + jax.random.uniform(k_ts, (n,), jnp.float32, minval=0.0, maxval=5.0)
        return h, mem_ts, ts

    # Case 1: N=76 (multiple of fold=4, nf=19 -> multi-step grid with a masked
    # partial last block), f32.
    h, mem_ts, ts = make_inputs(76, jnp.float32)
    out = jax.block_until_ready(layer(h, mem_ts, ts))
    ref = _jodie_ref(h, mem_ts, ts, weight, bias)
    assert out.shape == ref.shape and out.dtype == ref.dtype
    assert jnp.allclose(out, ref, atol=1e-5, rtol=1e-5), "mismatch (aligned f32)"

    # Case 2: N=78 (ragged: 2-row tail handled by the plain-JAX path), f32.
    h, mem_ts, ts = make_inputs(78, jnp.float32)
    out = jax.block_until_ready(layer(h, mem_ts, ts))
    ref = _jodie_ref(h, mem_ts, ts, weight, bias)
    assert out.shape == ref.shape
    assert jnp.allclose(out, ref, atol=1e-5, rtol=1e-5), "mismatch (ragged f32)"

    # Case 3: bf16 activations pass straight through (half the HBM traffic).
    h, mem_ts, ts = make_inputs(128, jnp.bfloat16)
    out = jax.block_until_ready(layer(h, mem_ts, ts))
    assert out.dtype == jnp.bfloat16
    ref = _jodie_ref(h.astype(jnp.float32), mem_ts, ts, weight, bias)
    assert jnp.allclose(out.astype(jnp.float32), ref, atol=2e-2, rtol=2e-2), \
        "mismatch (bf16)"

    print("KERNEL_OK")
</pallas_src>

<mosaic_0001>
module attributes {stable_mosaic.version = 11 : i64} {
  func.func @_jodie_kernel(%arg0: i32, %arg1: memref<8x4xf32, #tpu.memory_space<vmem>>, %arg2: memref<8x128xf32, #tpu.memory_space<vmem>>, %arg3: memref<4x128xf32, #tpu.memory_space<vmem>>, %arg4: memref<1x128xf32, #tpu.memory_space<vmem>>, %arg5: memref<8x128xf32, #tpu.memory_space<vmem>>) attributes {dimension_semantics = [#tpu.dimension_semantics<parallel>], iteration_bounds = array<i64: 3>, scalar_prefetch = 0 : i64, scratch_operands = 0 : i64, tpu.core_type = #tpu.core_type<tc>, window_params = [{transform_indices = @transform_0, window_bounds = array<i64: 8, 4>}, {transform_indices = @transform_1, window_bounds = array<i64: 8, 128>}, {pipeline_mode = #tpu.pipeline_mode<synchronous>, transform_indices = @transform_2, window_bounds = array<i64: 4, 128>}, {pipeline_mode = #tpu.pipeline_mode<synchronous>, transform_indices = @transform_3, window_bounds = array<i64: 1, 128>}, {transform_indices = @transform_4, window_bounds = array<i64: 8, 128>}]} {
    %c0 = arith.constant 0 : index
    %c0_0 = arith.constant 0 : index
    %0 = vector.load %arg1[%c0, %c0_0] : memref<8x4xf32, #tpu.memory_space<vmem>>, vector<8x4xf32>
    %c0_1 = arith.constant 0 : index
    %c0_2 = arith.constant 0 : index
    %1 = vector.load %arg3[%c0_1, %c0_2] : memref<4x128xf32, #tpu.memory_space<vmem>>, vector<4x128xf32>
    %cst = arith.constant dense<0.000000e+00> : vector<8x128xf32>
    %2 = tpu.matmul %0, %1, %cst {dimension_numbers = #tpu.dot_dimension_numbers<[1], [0], [0], [1], [0, 0, 1, 1], [], []>} : vector<8x4xf32>, vector<4x128xf32>, vector<8x128xf32> -> vector<8x128xf32>
    %c0_3 = arith.constant 0 : index
    %c0_4 = arith.constant 0 : index
    %3 = vector.load %arg4[%c0_3, %c0_4] : memref<1x128xf32, #tpu.memory_space<vmem>>, vector<1x128xf32>
    %4 = vector.broadcast %3 : vector<1x128xf32> to vector<8x128xf32>
    %5 = arith.addf %2, %4 : vector<8x128xf32>
    %c0_5 = arith.constant 0 : index
    %c0_6 = arith.constant 0 : index
    %6 = vector.load %arg2[%c0_5, %c0_6] : memref<8x128xf32, #tpu.memory_space<vmem>>, vector<8x128xf32>
    %7 = arith.mulf %6, %5 : vector<8x128xf32>
    %c0_7 = arith.constant 0 : index
    %c0_8 = arith.constant 0 : index
    %8 = vector.load %arg5[%c0_7, %c0_8] : memref<8x128xf32, #tpu.memory_space<vmem>>, vector<8x128xf32>
    tpu.vector_store %arg5[%c0_7, %c0_8], %7 {strides = array<i32>} : memref<8x128xf32, #tpu.memory_space<vmem>>, vector<8x128xf32>,
    return
  }
  func.func @transform_0(%arg0: i32) -> (i32, i32) {
    %c0_i32 = arith.constant 0 : i32
    %c0_i32_0 = arith.constant 0 : i32
    return %arg0, %c0_i32 : i32, i32
  }
  func.func @transform_1(%arg0: i32) -> (i32, i32) {
    %c0_i32 = arith.constant 0 : i32
    %c0_i32_0 = arith.constant 0 : i32
    return %arg0, %c0_i32 : i32, i32
  }
  func.func @transform_2(%arg0: i32) -> (i32, i32) {
    %c0_i32 = arith.constant 0 : i32
    %c0_i32_0 = arith.constant 0 : i32
    %c0_i32_1 = arith.constant 0 : i32
    return %c0_i32, %c0_i32_0 : i32, i32
  }
  func.func @transform_3(%arg0: i32) -> (i32, i32) {
    %c0_i32 = arith.constant 0 : i32
    %c0_i32_0 = arith.constant 0 : i32
    %c0_i32_1 = arith.constant 0 : i32
    return %c0_i32, %c0_i32_0 : i32, i32
  }
  func.func @transform_4(%arg0: i32) -> (i32, i32) {
    %c0_i32 = arith.constant 0 : i32
    %c0_i32_0 = arith.constant 0 : i32
    return %arg0, %c0_i32 : i32, i32
  }
}

</mosaic_0001>

<bundles_post_ra>
// kernel: forward.1
= control target key start
LH: loop header
LB: loop body
LE: loop exit
PB: predicated region body
PF: predicated region fallthrough
CT: control target
= control target key end

     0   :  { %s430_s15 = smov 0   ;;  %s456_s0 = inlined_call_operand.vmem [shape: f32[19,4], index: 0, kind: input, shape index: {}]   ;;  %s457_s1 = inlined_call_operand.vmem [shape: f32[19,128], index: 1, kind: input, shape index: {}]   ;;  %s458_s2 = inlined_call_operand.vmem [shape: f32[4,128], index: 2, kind: input, shape index: {}]   ;;  %s459_s3 = inlined_call_operand.vmem [shape: f32[1,128], index: 3, kind: input, shape index: {}]   ;;  %s460_s4 = inlined_call_operand.vmem [shape: f32[19,128], index: 4, kind: output, shape index: {}]  }
   0x1 LB: > { %s365_s16 = sadd.s32 4294967295, %s401_s15   ;;  %p369_p0 = scmp.ge.s32.totalorder %s401_s15, 1  ;;  %s401_s15 = sphi %s430_s15, %s14_s15  }
   0x2   : > { %p170_p1 = scmp.lt.s32.totalorder %s401_s15, 4 }
   0x4   : > { %p171_p2 = pnand %p369_p0, %p170_p1 }
   0x5   : > { %v211_v0 = vld [vmem:[%s458_s2] sm:$0xf] (!%p171_p2)  ;;  %vm223_vm0 = vcmask (!%p171_p2), 1043456   ;;  %p198_p3 = scmp.lt.s32.totalorder (!%p171_p2), %s365_s16, 2  ;;  %v403_v1 = vmov (!%p171_p2), 0.0   ;;  %vm404_vm1 = vmmov (!%p171_p2), 0  }
   0x6   : > { %174 = sbr.rel (%p171_p2) target bundleno = 234 (0xea), region = 36  ;;  %380 = vmatprep.subr.mxu0 (!%p171_p2), %v403_v1  ;;  %382 = vmatprep.mubr.msk.f32.mxu0 (!%p171_p2), %vm404_vm1, %v403_v1  ;;  %vm219_vm2 = vcmask (!%p171_p2), 31744   ;;  %v373_v3 = vld [vmem:[%s459_s3] ss:$0 sm:$0xff] (!%p171_p2) }
   0x7   : > { %381 = vmatpush3.msk.msra.mxu0 (!%p171_p2), %vm223_vm0, %v211_v0 }
   0xd   : > { %s462_s16 = smov (!%p198_p3, %s365_s16), 2 }
   0xe   : > { %s370_s19 = sshll.u32 %s462_s16, 3 }
   0xf   : > { %s201_s22 = scalar_lea.vmem %s456_s0, %s370_s19  ;;  %s205_s25 = scalar_lea.vmem %s457_s1, %s370_s19 }
  0x10   : > { %v210_v2 = vld [vmem:[%s201_s22] sm:$0xff]  ;;  %s209_s30 = scalar_lea.vmem %s460_s4, %s370_s19 }
  0x11   : > { %383 = vmatmul.mubr.msk.f32.vlgmr.msra.gmra.mrb[0].mxu0 %vm219_vm2, %v210_v2  ;;  %v297_v5 = vld [vmem:[%s205_s25] sm:$0xff] }
  0xe4   : > { %v293_v4 = vpop.f32.mrb[0].mxu0 }
  0xe5   : > { %v294_v6 = vadd.f32 %v373_v3, %v293_v4  ;;  %v384_v7 = vpop.f32.mrb[1].mxu0 }
  0xe7   : > { %v298_v8 = vmul.f32 %v297_v5, %v294_v6 }
  0xe9   : > { %299 = vst [vmem:[%s209_s30] sm:$0xff] %v298_v8 }
  0xea PF: > { %s14_s15 = sadd.s32 1, %s401_s15  }
  0xeb   : > { %p11_p4 = scmp.ge.s32.totalorder %s14_s15, 5  }
  0xed   :  { %13 = sbr.rel (!%p11_p4) target bundleno = 1 (0x1), region = 69 }

</bundles_post_ra>
